<compile_context>
chip_gen: v7x
topology: tpu7x:2x2x1
jax: 0.10.0
libtpu: 0.0.40
codegen_flags: <defaults>
</compile_context>

<pallas_src>
import jax
import jax.numpy as jnp
from jax.experimental import pallas as pl
from jax.experimental.pallas import tpu as pltpu

_LANE = 128
_SUBLANE = 8


def _round_up(n, m):
    return ((n + m - 1) // m) * m


def _sigmoid(y):
    # sigmoid(y) == 0.5 * tanh(0.5 * y) + 0.5 : one EUP transcendental
    # (tanh) plus cheap VPU mul/adds, instead of exp + divide.
    return 0.5 * jnp.tanh(0.5 * y) + 0.5


def _qnet_kernel(x_ref, w1_ref, b1_ref, w2_ref, b2_ref, w3_ref, b3_ref, q_ref):
    # Layer 1: [TB, S] @ [S, 256]  (bf16 operands, f32 accumulation on MXU)
    h1 = jnp.dot(x_ref[...].astype(jnp.bfloat16), w1_ref[...],
                 preferred_element_type=jnp.float32)
    h1 = _sigmoid(h1 + b1_ref[...])                 # f32 bias + single-EUP sigmoid
    # Layer 2: [TB, 256] @ [256, 128]
    h2 = jnp.dot(h1.astype(jnp.bfloat16), w2_ref[...],
                 preferred_element_type=jnp.float32)
    h2 = _sigmoid(h2 + b2_ref[...])
    # Layer 3: [TB, 128] @ [128, A_pad]  (A_pad small -> tiny HBM writeback)
    q = jnp.dot(h2.astype(jnp.bfloat16), w3_ref[...],
                preferred_element_type=jnp.float32)
    q_ref[...] = (q + b3_ref[...]).astype(q_ref.dtype)


def init_params(key, state_dim, action_dim):
    """Deterministic synthetic init matching nn.Linear shapes (stored transposed, f32)."""
    k1, k2, k3, k4, k5, k6 = jax.random.split(key, 6)

    def uniform(k, shape, fan_in):
        bound = 1.0 / jnp.sqrt(fan_in)
        return jax.random.uniform(k, shape, jnp.float32, -bound, bound)

    return {
        # fc1: nn.Linear(state_dim, 256) -> stored as (state_dim, 256)
        "w1": uniform(k1, (state_dim, 256), state_dim),
        "b1": uniform(k2, (1, 256), state_dim),
        # fc2: nn.Linear(256, 128) -> stored as (256, 128)
        "w2": uniform(k3, (256, 128), 256),
        "b2": uniform(k4, (1, 128), 256),
        # fc3: nn.Linear(128, action_dim) -> stored as (128, action_dim)
        "w3": uniform(k5, (128, action_dim), 128),
        "b3": uniform(k6, (1, action_dim), 128),
    }


def pack_params(params):
    """One-time prep: bf16 matmul weights; fc3 weight/bias zero-padded to a_pad lanes.

    a_pad is the smallest legal output width: a multiple of 8 for small
    action_dim (block == full array dim satisfies the lane rule, and HBM
    writeback stays ~action_dim-sized), or a multiple of 128 for large
    action_dim (lane-dense stores).
    """
    action_dim = params["w3"].shape[1]
    if action_dim >= _LANE:
        a_pad = _round_up(action_dim, _LANE)
    else:
        a_pad = _round_up(action_dim, _SUBLANE)
    w3 = jnp.zeros((params["w3"].shape[0], a_pad), jnp.float32)
    w3 = w3.at[:, :action_dim].set(params["w3"])
    b3 = jnp.zeros((1, a_pad), jnp.float32)
    b3 = b3.at[:, :action_dim].set(params["b3"])
    return {
        "w1": params["w1"].astype(jnp.bfloat16),
        "b1": params["b1"].astype(jnp.float32),
        "w2": params["w2"].astype(jnp.bfloat16),
        "b2": params["b2"].astype(jnp.float32),
        "w3": w3.astype(jnp.bfloat16),
        "b3": b3,
    }


def q_net_forward(x, packed, action_dim, *, block_batch=2048):
    """x: [batch, state_dim] f32. packed: output of pack_params. Returns [batch, action_dim] f32."""
    batch, state_dim = x.shape
    w1, b1 = packed["w1"], packed["b1"]
    w2, b2 = packed["w2"], packed["b2"]
    w3, b3 = packed["w3"], packed["b3"]
    a_pad = w3.shape[1]

    # --- Batch tiling -------------------------------------------------------
    padded8 = _round_up(batch, _SUBLANE)
    # Number of grid steps: enough that (a) each tile <= block_batch and
    # (b) the v7x megacore gets >= 2 "parallel" steps whenever there are at
    #     least two sublane groups of work (harmless on v5e/v6e).
    n_steps = max(pl.cdiv(padded8, block_batch), 1)
    if padded8 >= 2 * _SUBLANE:
        n_steps = max(n_steps, 2)
    # Balanced tile size (multiple of 8 sublanes) -> last-tile waste bounded
    # by a few rows instead of up to tb-1.
    tb = _round_up(pl.cdiv(padded8, n_steps), _SUBLANE)
    n_steps = pl.cdiv(padded8, tb)
    padded = n_steps * tb

    if padded != batch:
        x = jnp.pad(x, ((0, padded - batch), (0, 0)))
    grid = (n_steps,)

    resident = lambda i: (0, 0)  # weights/biases: same block every step -> stay in VMEM

    q_padded = pl.pallas_call(
        _qnet_kernel,
        out_shape=jax.ShapeDtypeStruct((padded, a_pad), jnp.float32),
        grid=grid,
        in_specs=[
            pl.BlockSpec((tb, state_dim), lambda i: (i, 0)),   # x tile
            pl.BlockSpec(w1.shape, resident),
            pl.BlockSpec(b1.shape, resident),
            pl.BlockSpec(w2.shape, resident),
            pl.BlockSpec(b2.shape, resident),
            pl.BlockSpec(w3.shape, resident),
            pl.BlockSpec(b3.shape, resident),
        ],
        out_specs=pl.BlockSpec((tb, a_pad), lambda i: (i, 0)),
        compiler_params=pltpu.CompilerParams(
            dimension_semantics=("parallel",)),
    )(x, w1, b1, w2, b2, w3, b3)

    if padded == batch and a_pad == action_dim:
        return q_padded                       # no slice pass needed
    return q_padded[:batch, :action_dim]


def q_net_ref_f32(x, params):
    """Pure-f32 JAX reference (PyTorch-equivalent math)."""
    h = jax.nn.sigmoid(x @ params["w1"] + params["b1"])
    h = jax.nn.sigmoid(h @ params["w2"] + params["b2"])
    return h @ params["w3"] + params["b3"]


def q_net_ref_mixed(x, packed, action_dim):
    """Reference that mimics the kernel's precision (bf16 matmul inputs, f32 accumulate)."""
    h = jnp.dot(x.astype(jnp.bfloat16), packed["w1"],
                preferred_element_type=jnp.float32) + packed["b1"]
    h = jax.nn.sigmoid(h)
    h = jnp.dot(h.astype(jnp.bfloat16), packed["w2"],
                preferred_element_type=jnp.float32) + packed["b2"]
    h = jax.nn.sigmoid(h)
    q = jnp.dot(h.astype(jnp.bfloat16), packed["w3"],
                preferred_element_type=jnp.float32) + packed["b3"]
    return q[:, :action_dim]


if __name__ == "__main__":
    state_dim = 8
    action_dim = 4

    key = jax.random.PRNGKey(0)
    kx, kp, kx2 = jax.random.split(key, 3)
    params = init_params(kp, state_dim, action_dim)
    packed = pack_params(params)

    # --- Small case (batch=2, single grid step) -----------------------------
    batch = 2
    x = jax.random.normal(kx, (batch, state_dim), jnp.float32)
    q = jax.block_until_ready(q_net_forward(x, packed, action_dim))
    assert q.shape == (batch, action_dim)

    q_mixed = q_net_ref_mixed(x, packed, action_dim)
    assert jnp.allclose(q, q_mixed, atol=1e-3, rtol=1e-3), (
        f"max abs err vs mixed ref: {jnp.max(jnp.abs(q - q_mixed))}")
    q_f32 = q_net_ref_f32(x, params)
    assert jnp.allclose(q, q_f32, atol=5e-2, rtol=5e-2), (
        f"max abs err vs f32 ref: {jnp.max(jnp.abs(q - q_f32))}")

    # --- Multi-tile case (batch=20 -> 2 grid steps, padded batch) -----------
    batch2 = 20
    x2 = jax.random.normal(kx2, (batch2, state_dim), jnp.float32)
    q2 = jax.block_until_ready(q_net_forward(x2, packed, action_dim))
    assert q2.shape == (batch2, action_dim)
    q2_mixed = q_net_ref_mixed(x2, packed, action_dim)
    assert jnp.allclose(q2, q2_mixed, atol=1e-3, rtol=1e-3), (
        f"max abs err vs mixed ref (multi-tile): {jnp.max(jnp.abs(q2 - q2_mixed))}")

    print("KERNEL_OK")
</pallas_src>

<mosaic_0001>
module attributes {stable_mosaic.version = 11 : i64} {
  func.func @_qnet_kernel(%arg0: i32, %arg1: memref<8x8xf32, #tpu.memory_space<vmem>>, %arg2: memref<8x256xbf16, #tpu.memory_space<vmem>>, %arg3: memref<1x256xf32, #tpu.memory_space<vmem>>, %arg4: memref<256x128xbf16, #tpu.memory_space<vmem>>, %arg5: memref<1x128xf32, #tpu.memory_space<vmem>>, %arg6: memref<128x8xbf16, #tpu.memory_space<vmem>>, %arg7: memref<1x8xf32, #tpu.memory_space<vmem>>, %arg8: memref<8x8xf32, #tpu.memory_space<vmem>>) attributes {dimension_semantics = [#tpu.dimension_semantics<parallel>], iteration_bounds = array<i64: 1>, scalar_prefetch = 0 : i64, scratch_operands = 0 : i64, tpu.core_type = #tpu.core_type<tc>, window_params = [{transform_indices = @transform_0, window_bounds = array<i64: 8, 8>}, {pipeline_mode = #tpu.pipeline_mode<synchronous>, transform_indices = @transform_1, window_bounds = array<i64: 8, 256>}, {pipeline_mode = #tpu.pipeline_mode<synchronous>, transform_indices = @transform_2, window_bounds = array<i64: 1, 256>}, {pipeline_mode = #tpu.pipeline_mode<synchronous>, transform_indices = @transform_3, window_bounds = array<i64: 256, 128>}, {pipeline_mode = #tpu.pipeline_mode<synchronous>, transform_indices = @transform_4, window_bounds = array<i64: 1, 128>}, {pipeline_mode = #tpu.pipeline_mode<synchronous>, transform_indices = @transform_5, window_bounds = array<i64: 128, 8>}, {pipeline_mode = #tpu.pipeline_mode<synchronous>, transform_indices = @transform_6, window_bounds = array<i64: 1, 8>}, {transform_indices = @transform_7, window_bounds = array<i64: 8, 8>}]} {
    %c0 = arith.constant 0 : index
    %c0_0 = arith.constant 0 : index
    %0 = vector.load %arg1[%c0, %c0_0] : memref<8x8xf32, #tpu.memory_space<vmem>>, vector<8x8xf32>
    %1 = arith.truncf %0 : vector<8x8xf32> to vector<8x8xbf16>
    %c0_1 = arith.constant 0 : index
    %c0_2 = arith.constant 0 : index
    %2 = vector.load %arg2[%c0_1, %c0_2] : memref<8x256xbf16, #tpu.memory_space<vmem>>, vector<8x256xbf16>
    %cst = arith.constant dense<0.000000e+00> : vector<8x256xf32>
    %3 = tpu.matmul %1, %2, %cst {dimension_numbers = #tpu.dot_dimension_numbers<[1], [0], [0], [1], [0, 0, 1, 1], [], []>} : vector<8x8xbf16>, vector<8x256xbf16>, vector<8x256xf32> -> vector<8x256xf32>
    %c0_3 = arith.constant 0 : index
    %c0_4 = arith.constant 0 : index
    %4 = vector.load %arg3[%c0_3, %c0_4] : memref<1x256xf32, #tpu.memory_space<vmem>>, vector<1x256xf32>
    %5 = vector.broadcast %4 : vector<1x256xf32> to vector<8x256xf32>
    %6 = arith.addf %3, %5 : vector<8x256xf32>
    %cst_5 = arith.constant 5.000000e-01 : f32
    %7 = vector.broadcast %cst_5 : f32 to vector<8x256xf32>
    %8 = arith.mulf %7, %6 : vector<8x256xf32>
    %9 = math.tanh %8 : vector<8x256xf32>
    %cst_6 = arith.constant 5.000000e-01 : f32
    %10 = vector.broadcast %cst_6 : f32 to vector<8x256xf32>
    %11 = arith.mulf %10, %9 : vector<8x256xf32>
    %cst_7 = arith.constant 5.000000e-01 : f32
    %12 = vector.broadcast %cst_7 : f32 to vector<8x256xf32>
    %13 = arith.addf %11, %12 : vector<8x256xf32>
    %14 = arith.truncf %13 : vector<8x256xf32> to vector<8x256xbf16>
    %c0_8 = arith.constant 0 : index
    %c0_9 = arith.constant 0 : index
    %15 = vector.load %arg4[%c0_8, %c0_9] : memref<256x128xbf16, #tpu.memory_space<vmem>>, vector<256x128xbf16>
    %cst_10 = arith.constant dense<0.000000e+00> : vector<8x128xf32>
    %16 = tpu.matmul %14, %15, %cst_10 {dimension_numbers = #tpu.dot_dimension_numbers<[1], [0], [0], [1], [0, 0, 1, 1], [], []>} : vector<8x256xbf16>, vector<256x128xbf16>, vector<8x128xf32> -> vector<8x128xf32>
    %c0_11 = arith.constant 0 : index
    %c0_12 = arith.constant 0 : index
    %17 = vector.load %arg5[%c0_11, %c0_12] : memref<1x128xf32, #tpu.memory_space<vmem>>, vector<1x128xf32>
    %18 = vector.broadcast %17 : vector<1x128xf32> to vector<8x128xf32>
    %19 = arith.addf %16, %18 : vector<8x128xf32>
    %cst_13 = arith.constant 5.000000e-01 : f32
    %20 = vector.broadcast %cst_13 : f32 to vector<8x128xf32>
    %21 = arith.mulf %20, %19 : vector<8x128xf32>
    %22 = math.tanh %21 : vector<8x128xf32>
    %cst_14 = arith.constant 5.000000e-01 : f32
    %23 = vector.broadcast %cst_14 : f32 to vector<8x128xf32>
    %24 = arith.mulf %23, %22 : vector<8x128xf32>
    %cst_15 = arith.constant 5.000000e-01 : f32
    %25 = vector.broadcast %cst_15 : f32 to vector<8x128xf32>
    %26 = arith.addf %24, %25 : vector<8x128xf32>
    %27 = arith.truncf %26 : vector<8x128xf32> to vector<8x128xbf16>
    %c0_16 = arith.constant 0 : index
    %c0_17 = arith.constant 0 : index
    %28 = vector.load %arg6[%c0_16, %c0_17] : memref<128x8xbf16, #tpu.memory_space<vmem>>, vector<128x8xbf16>
    %cst_18 = arith.constant dense<0.000000e+00> : vector<8x8xf32>
    %29 = tpu.matmul %27, %28, %cst_18 {dimension_numbers = #tpu.dot_dimension_numbers<[1], [0], [0], [1], [0, 0, 1, 1], [], []>} : vector<8x128xbf16>, vector<128x8xbf16>, vector<8x8xf32> -> vector<8x8xf32>
    %c0_19 = arith.constant 0 : index
    %c0_20 = arith.constant 0 : index
    %30 = vector.load %arg7[%c0_19, %c0_20] : memref<1x8xf32, #tpu.memory_space<vmem>>, vector<1x8xf32>
    %31 = vector.broadcast %30 : vector<1x8xf32> to vector<8x8xf32>
    %32 = arith.addf %29, %31 : vector<8x8xf32>
    %c0_21 = arith.constant 0 : index
    %c0_22 = arith.constant 0 : index
    %33 = vector.load %arg8[%c0_21, %c0_22] : memref<8x8xf32, #tpu.memory_space<vmem>>, vector<8x8xf32>
    tpu.vector_store %arg8[%c0_21, %c0_22], %32 {strides = array<i32>} : memref<8x8xf32, #tpu.memory_space<vmem>>, vector<8x8xf32>,
    return
  }
  func.func @transform_0(%arg0: i32) -> (i32, i32) {
    %c0_i32 = arith.constant 0 : i32
    %c0_i32_0 = arith.constant 0 : i32
    return %arg0, %c0_i32 : i32, i32
  }
  func.func @transform_1(%arg0: i32) -> (i32, i32) {
    %c0_i32 = arith.constant 0 : i32
    %c0_i32_0 = arith.constant 0 : i32
    %c0_i32_1 = arith.constant 0 : i32
    return %c0_i32, %c0_i32_0 : i32, i32
  }
  func.func @transform_2(%arg0: i32) -> (i32, i32) {
    %c0_i32 = arith.constant 0 : i32
    %c0_i32_0 = arith.constant 0 : i32
    %c0_i32_1 = arith.constant 0 : i32
    return %c0_i32, %c0_i32_0 : i32, i32
  }
  func.func @transform_3(%arg0: i32) -> (i32, i32) {
    %c0_i32 = arith.constant 0 : i32
    %c0_i32_0 = arith.constant 0 : i32
    %c0_i32_1 = arith.constant 0 : i32
    return %c0_i32, %c0_i32_0 : i32, i32
  }
  func.func @transform_4(%arg0: i32) -> (i32, i32) {
    %c0_i32 = arith.constant 0 : i32
    %c0_i32_0 = arith.constant 0 : i32
    %c0_i32_1 = arith.constant 0 : i32
    return %c0_i32, %c0_i32_0 : i32, i32
  }
  func.func @transform_5(%arg0: i32) -> (i32, i32) {
    %c0_i32 = arith.constant 0 : i32
    %c0_i32_0 = arith.constant 0 : i32
    %c0_i32_1 = arith.constant 0 : i32
    return %c0_i32, %c0_i32_0 : i32, i32
  }
  func.func @transform_6(%arg0: i32) -> (i32, i32) {
    %c0_i32 = arith.constant 0 : i32
    %c0_i32_0 = arith.constant 0 : i32
    %c0_i32_1 = arith.constant 0 : i32
    return %c0_i32, %c0_i32_0 : i32, i32
  }
  func.func @transform_7(%arg0: i32) -> (i32, i32) {
    %c0_i32 = arith.constant 0 : i32
    %c0_i32_0 = arith.constant 0 : i32
    return %arg0, %c0_i32 : i32, i32
  }
}

</mosaic_0001>

<bundles_post_ra>
// kernel: tpu_custom_call.1
= control target key start
LH: loop header
LB: loop body
LE: loop exit
PB: predicated region body
PF: predicated region fallthrough
CT: control target
= control target key end

     0   :  { %12 = vsyncpa [#allocation3], 0  ;;  %s711_s0 = inlined_call_operand.vmem [shape: f32[8,8], index: 0, kind: input, shape index: {}]   ;;  %s712_s1 = inlined_call_operand.vmem [shape: bf16[8,256], index: 1, kind: input, shape index: {}]   ;;  %s713_s2 = inlined_call_operand.vmem [shape: f32[1,256], index: 2, kind: input, shape index: {}]   ;;  %s714_s3 = inlined_call_operand.hbm [shape: bf16[256,128], index: 3, kind: input, shape index: {}]   ;;  %s715_s4 = inlined_call_operand.vmem [shape: f32[1,128], index: 4, kind: input, shape index: {}]   ;;  %s716_s5 = inlined_call_operand.vmem [shape: bf16[128,8], index: 5, kind: input, shape index: {}]   ;;  %s717_s6 = inlined_call_operand.vmem [shape: f32[1,8], index: 6, kind: input, shape index: {}]   ;;  %s718_s7 = inlined_call_operand.hbm [shape: f32[8,8], index: 7, kind: output, shape index: {}]  }
   0x1   :  { %13 = vsyncpa [#allocation4], 0  ;;  %s599_s24 = smov [#allocation2]   ;;  %s551_s28 = scalar_lea.hbm %s714_s3, 2048 }
   0x2   :  { %s25_s25 = sshll.u32 %s599_s24, 4  ;;  %p552_p0 = scmp.ne.s32.totalorder %s714_s3, %s551_s28  ;;  %s26_s25 = int_to_ptr.vmem [resolvable:$true] %s25_s25 }
   0x3   :  { %p555_p1 = scmp.lt.u32.totalorder %s551_s28, %s714_s3 }
   0x5   :  { %p557_p2 = pnand %p555_p1, %p552_p0 }
   0x7   :  { %560 = shalt.err (!%p557_p2)
}
   0x8   :  { %s561_s10 = scalar_lea.vmem %s26_s25, 2048  ;;  %p566_p4 = scmp.lt.s32.totalorder %s26_s25, %s26_s25 }
   0x9   :  { %p562_p3 = scmp.ne.s32.totalorder %s26_s25, %s561_s10  ;;  %p567_p5 = scmp.lt.s32.totalorder %s561_s10, %s561_s10 }
   0xb   :  { %p568_p6 = por %p567_p5, %p566_p4 }
   0xd   :  { %p569_p7 = pnand %p568_p6, %p562_p3 }
   0xf   :  { %572 = shalt.err (!%p569_p7)
}
  0x10   :  { %s600_s11 = smov 64   ;;  %s601_s12 = smov 4  }
  0x11   :  { %31 = dma.hbm_to_vmem [thread:$0]  %s714_s3, 2048, %s26_s25, [#allocation3], %s600_s11, %s600_s11, %s601_s12  }
  0x12   :  { %595 = dma.done.wait [#allocation3], 2048  }
  0x13   :  { %596 = vsyncadd [#allocation3], 4294965248  ;;  %v602_v0 = vmov 0   ;;  %v44_v1 = vld [vmem:[%s712_s1] sm:$0xff]  ;;  %vm66_vm0 = vcmask 1043456   ;;  %v523_v9 = vld [vmem:[#allocation2 + $0x48] sm:$0xff]   ;;  %v47_v26 = vlaneseq }
  0x14   :  { %105 = vmatprep.mubr.bf16.mxu0 %v602_v0  ;;  %v42_v2 = vld [vmem:[%s711_s0] sm:$0xff]  ;;  %v432_v3 = vcombine.high %v44_v1, %v44_v1  ;;  %v431_v4 = vcombine.low %v44_v1, %v44_v1  ;;  %vm62_vm1 = vcmask 64512   ;;  %v524_v10 = vld [vmem:[#allocation2 + $0x8] sm:$0xff]   ;;  %v525_v11 = vld [vmem:[#allocation2 + $0x50] sm:$0xff]   ;;  %v603_v24 = vmov 0.0   ;;  %s605_s13 = smov [#allocation5]  }
  0x15   :  { %v521_v5 = vld [vmem:[#allocation2 + $0x40] sm:$0xff]   ;;  %v43_v8 = vpack.c.bf16 %v42_v2, %v42_v2  ;;  %v526_v12 = vld [vmem:[#allocation2 + $0x10] sm:$0xff]   ;;  %v527_v13 = vld [vmem:[#allocation2 + $0x58] sm:$0xff]   ;;  %v48_v27 = vshrl.u32 %v47_v26, 7  ;;  %vm604_vm2 = vmmov 0   ;;  %s422_s14 = sshll.u32 %s605_s13, 4  ;;  %s423_s14 = int_to_ptr.vmem [resolvable:$true] %s422_s14 }
  0x16   :  { %v522_v6 = vld [vmem:[#allocation2] sm:$0xff]   ;;  %433 = vmatprep.subr.msk.bf16.mxu0 %vm66_vm0, %v432_v3  ;;  %v68_v7 = vsel %vm66_vm0, %v431_v4, 0  ;;  %461 = vmatprep.subr.bf16.mxu1 %v521_v5  ;;  %v528_v14 = vld [vmem:[#allocation2 + $0x18] sm:$0xff]   ;;  %v531_v17 = vld [vmem:[#allocation2 + $0x68] sm:$0xff]   ;;  %p578_p9 = scmp.lt.s32.totalorder %s423_s14, %s423_s14 }
  0x17   :  { %74 = vmatpush1.bf16.msra.mxu0 %v68_v7  ;;  %462 = vmatpush3.bf16.msra.mxu1 %v522_v6  ;;  %v529_v15 = vld [vmem:[#allocation2 + $0x60] sm:$0xff]   ;;  %v532_v18 = vld [vmem:[#allocation2 + $0x28] sm:$0xff]   ;;  %v533_v19 = vld [vmem:[#allocation2 + $0x70] sm:$0xff]   ;;  %v49_v28 = vsub.s32 0, %v48_v27  ;;  %v53_v30 = vsub.s32 1, %v48_v27 }
  0x18   :  { %463 = vmatprep.subr.bf16.mxu1 %v523_v9  ;;  %v530_v16 = vld [vmem:[#allocation2 + $0x20] sm:$0xff]   ;;  %v534_v20 = vld [vmem:[#allocation2 + $0x30] sm:$0xff]   ;;  %v535_v21 = vld [vmem:[#allocation2 + $0x78] sm:$0xff]   ;;  %492 = vmatprep.subr.bf16.mxu0 %v603_v24 }
  0x19   :  { %v536_v22 = vld [vmem:[#allocation2 + $0x38] sm:$0xff]   ;;  %v537_v23 = vld [vmem:[%s716_s5] sm:$0xff]   ;;  %v538_v25 = vld [vmem:[%s716_s5 + $0x8] sm:$0xff]  }
  0x1a   :  { %434 = vmatmul.mubr.msk.bf16.vlgmr.msra.gmra.mrb[0].mxu0 %vm62_vm1, %v43_v8  ;;  %v45_v29 = vld [vmem:[%s713_s2] sm:$0x3]  ;;  %v539_v49 = vld [vmem:[%s716_s5 + $0x10] sm:$0xff]   ;;  %v540_v50 = vld [vmem:[%s716_s5 + $0x18] sm:$0xff]  }
  0x1b   :  { %464 = vmatpush3.bf16.msra.mxu1 %v524_v10  ;;  %493 = vmatpush3.bf16.msra.mxu0 %v537_v23  ;;  %v50_v31 = vrot.slane %v45_v29, %v49_v28  ;;  %v54_v32 = vrot.slane %v45_v29, %v53_v30  ;;  %v541_v51 = vld [vmem:[%s716_s5 + $0x20] sm:$0xff]   ;;  %v542_v52 = vld [vmem:[%s716_s5 + $0x28] sm:$0xff]   ;;  %v543_v53 = vld [vmem:[%s716_s5 + $0x30] sm:$0xff]  }
  0x1c   :  { %465 = vmatprep.subr.bf16.mxu1 %v525_v11  ;;  %494 = vmatprep.subr.bf16.mxu0 %v603_v24  ;;  %v544_v54 = vld [vmem:[%s716_s5 + $0x38] sm:$0xff]   ;;  %v435_v56 = vld [vmem:[%s715_s4] ss:$0 sm:$0xff]  ;;  %s573_s4 = scalar_lea.vmem %s423_s14, 128 }
  0x1d   :  { %508 = vmatprep.mubr.msk.bf16.mxu0 %vm604_vm2, %v603_v24  ;;  %v452_v3 = vld [vmem:[%s717_s6] ss:$0 sm:$0xff]  ;;  %p574_p8 = scmp.ne.s32.totalorder %s423_s14, %s573_s4  ;;  %p579_p10 = scmp.lt.s32.totalorder %s573_s4, %s573_s4 }
  0x1f   :  { %466 = vmatpush3.bf16.msra.mxu1 %v526_v12  ;;  %495 = vmatpush3.bf16.msra.mxu0 %v538_v25  ;;  %p580_p11 = por %p579_p10, %p578_p9 }
  0x20   :  { %467 = vmatprep.subr.bf16.mxu1 %v527_v13  ;;  %496 = vmatprep.subr.bf16.mxu0 %v603_v24 }
  0x21   :  { %p581_p12 = pnand %p580_p11, %p574_p8 }
  0x23   :  { %468 = vmatpush3.bf16.msra.mxu1 %v528_v14  ;;  %497 = vmatpush3.bf16.msra.mxu0 %v539_v49 }
  0x24   :  { %469 = vmatprep.subr.bf16.mxu1 %v529_v15  ;;  %498 = vmatprep.subr.bf16.mxu0 %v603_v24 }
  0x27   :  { %470 = vmatpush3.bf16.msra.mxu1 %v530_v16  ;;  %499 = vmatpush3.bf16.msra.mxu0 %v540_v50 }
  0x28   :  { %471 = vmatprep.subr.bf16.mxu1 %v531_v17  ;;  %500 = vmatprep.subr.bf16.mxu0 %v603_v24 }
  0x2b   :  { %472 = vmatpush3.bf16.msra.mxu1 %v532_v18  ;;  %501 = vmatpush3.bf16.msra.mxu0 %v541_v51 }
  0x2c   :  { %473 = vmatprep.subr.bf16.mxu1 %v533_v19  ;;  %502 = vmatprep.subr.bf16.mxu0 %v603_v24 }
  0x2f   :  { %474 = vmatpush3.bf16.msra.mxu1 %v534_v20  ;;  %503 = vmatpush3.bf16.msra.mxu0 %v542_v52 }
  0x30   :  { %475 = vmatprep.subr.bf16.mxu1 %v535_v21  ;;  %504 = vmatprep.subr.bf16.mxu0 %v603_v24 }
  0x33   :  { %476 = vmatpush3.bf16.msra.mxu1 %v536_v22  ;;  %505 = vmatpush3.bf16.msra.mxu0 %v543_v53 }
  0x34   :  { %506 = vmatprep.subr.bf16.mxu0 %v603_v24 }
  0x37   :  { %507 = vmatpush3.bf16.msra.mxu0 %v544_v54 }
  0xed   :  { %v107_v33 = vpop.f32.mrb[0].mxu0 }
  0xee   :  { %v108_v34 = vadd.f32 %v107_v33, %v50_v31  ;;  %v109_v35 = vpop.f32.mrb[1].mxu0 }
  0xef   :  { %v110_v36 = vadd.f32 %v109_v35, %v54_v32  ;;  %v111_v37 = vpop.f32.mrb[2].mxu0 }
  0xf0   :  { %v114_v38 = vmul.f32 0.5, %v108_v34  ;;  %v112_v39 = vpop.f32.mrb[3].mxu0 }
  0xf1   :  { %v115_v40 = vmul.f32 0.5, %v110_v36 }
  0xf2   :  { %545 = vtanh.f32 %v114_v38 }
  0xf3   :  { %547 = vtanh.f32 %v115_v40 }
  0xfc   :  { %v546_v41 = vpop.eup %545 }
  0xfd   :  { %v548_v42 = vpop.eup %547  ;;  %v118_v43 = vmul.f32 0.5, %v546_v41 }
  0xfe   :  { %v119_v44 = vmul.f32 0.5, %v548_v42 }
  0xff   :  { %v120_v45 = vadd.f32 0.5, %v118_v43 }
 0x100   :  { %v121_v46 = vadd.f32 0.5, %v119_v44 }
 0x101   :  { %v122_v48 = vpack.c.bf16 %v120_v45, %v120_v45 }
 0x102   :  { %v123_v47 = vpack.c.bf16 %v121_v46, %v121_v46 }
 0x104   :  { %291 = vmatprep.mubr.bf16.mxu1 %v123_v47 }
 0x105   :  { %292 = vmatmul.mubr.bf16.vlgmr.msra.gmra.mrb[0].mxu1 %v122_v48 }
 0x1d8   :  { %v477_v55 = vpop.f32.mrb[0].mxu1 }
 0x1d9   :  { %v478_v57 = vpop.f32.mrb[1].mxu1 }
 0x1da   :  { %v479_v58 = vadd.f32 %v478_v57, %v477_v55  ;;  %v480_v59 = vpop.f32.mrb[2].mxu1 }
 0x1db   :  { %v481_v60 = vpop.f32.mrb[3].mxu1 }
 0x1dc   :  { %v294_v61 = vadd.f32 %v479_v58, %v435_v56 }
 0x1de   :  { %v299_v62 = vmul.f32 0.5, %v294_v61 }
 0x1e0   :  { %549 = vtanh.f32 %v299_v62 }
 0x1ea   :  { %v550_v63 = vpop.eup %549 }
 0x1eb   :  { %v301_v0 = vmul.f32 0.5, %v550_v63 }
 0x1ed   :  { %v302_v1 = vadd.f32 0.5, %v301_v0 }
 0x1ef   :  { %v303_v2 = vpack.c.bf16 %v302_v1, %v302_v1 }
 0x1f1   :  { %509 = vmatmul.mubr.bf16.vlgmr.msra.gmra.mrb[4].mxu0 %v303_v2 }
 0x2c4   :  { %v409_v4 = vpop.f32.mrb[4].mxu0 }
 0x2c5   :  { %v410_v5 = vadd.f32 %v452_v3, %v409_v4  ;;  %v510_v6 = vpop.f32.mrb[5].mxu0 }
 0x2c6   :  { %v412_v7 = vpop.f32.mrb[6].mxu0 }
 0x2c7   :  { %415 = vst.msk [vmem:[#allocation5] sm:$0xff] %vm62_vm1, %v410_v5  ;;  %v511_v8 = vpop.f32.mrb[7].mxu0 }
 0x2c8   :  { %584 = shalt.err (!%p581_p12)
}
 0x2c9   :  { %s585_s6 = scalar_lea.hbm %s718_s7, 128 }
 0x2ca   :  { %p586_p13 = scmp.ne.s32.totalorder %s718_s7, %s585_s6  ;;  %p589_p0 = scmp.lt.u32.totalorder %s585_s6, %s718_s7 }
 0x2cc   :  { %p591_p1 = pnand %p589_p0, %p586_p13 }
 0x2ce   :  { %594 = shalt.err (!%p591_p1)
}
 0x2cf   :  { %425 = dma.vmem_to_hbm [thread:$0]  %s423_s14, 128, %s718_s7, [#allocation4]  }
 0x2d0   :  { %597 = dma.done.wait [#allocation4], 128  }
 0x2d1   :  { %598 = vsyncadd [#allocation4], 4294967168 }
 0x2d2   :  { %429 = vsyncpa [#allocation3], 1 }
 0x2d3   :  { %430 = vsyncpa [#allocation4], 1 }

</bundles_post_ra>
